<compile_context>
chip_gen: v5e
topology: v5e:2x2
jax: 0.10.0
libtpu: 0.0.40
codegen_flags: <defaults>
</compile_context>

<pallas_src>
import functools

import jax
import jax.numpy as jnp
from jax.experimental import pallas as pl
from jax.experimental.pallas import tpu as pltpu


def _round_up(x, m):
    return (x + m - 1) // m * m


def _embed_kernel(ids_ref, patches_ref, w_ref, table_ref, out_ref):
    # ids_ref:     (TM, 1)       int32  positional-embedding indices (this tile)
    # patches_ref: (TM, K_pad)   bf16   flattened patches (this M tile)
    # w_ref:       (K_pad, TN)   bf16   reshaped conv weight (resident in inner loop)
    # table_ref:   (NP_pad, TN)  bf16   pos table with (conv_bias + img_emb) folded in
    # out_ref:     (TM, TN)
    tm = patches_ref.shape[0]
    n_pos = table_ref.shape[0]

    # Patch projection: bf16 on the MXU, f32 accumulation.
    acc = jnp.dot(patches_ref[...], w_ref[...],
                  preferred_element_type=jnp.float32)

    # Positional-embedding gather as a bf16 one-hot matmul (one-hot values are
    # exact in bf16; only table values are rounded). Avoids materializing an
    # (M, H) gathered array in HBM.
    ids = ids_ref[...]                                            # (TM, 1)
    iota = jax.lax.broadcasted_iota(jnp.int32, (tm, n_pos), 1)    # (TM, NP)
    onehot = (iota == ids).astype(jnp.bfloat16)                   # (TM, NP)
    pos = jnp.dot(onehot, table_ref[...],
                  preferred_element_type=jnp.float32)             # (TM, TN)

    out_ref[...] = (acc + pos).astype(out_ref.dtype)


def image_embedder_forward(img, pos_inp, params, *, patch_size, hidden_dim,
                           tile_m=1024, out_dtype=None):
    """Pallas implementation of ImageEmbedder.forward (eval mode)."""
    B, C, Himg, Wimg = img.shape
    P = patch_size
    Hgrid, Wgrid = Himg // P, Wimg // P
    num_patches = Hgrid * Wgrid
    K = C * P * P
    M = B * num_patches
    out_dtype = img.dtype if out_dtype is None else out_dtype

    # ---- glue: patchify (pure reshape/transpose, no compute) -------------
    # (B, C, Hg, P, Wg, P) -> (B, Hg, Wg, C, P, P) -> (M, K)
    patches = img.reshape(B, C, Hgrid, P, Wgrid, P)
    patches = patches.transpose(0, 2, 4, 1, 3, 5).reshape(M, K)
    patches = patches.astype(jnp.bfloat16)

    # Pad contraction (K), lanes (hidden) and table rows (NP) to 128.
    K_pad = _round_up(K, 128)
    H_pad = _round_up(hidden_dim, 128)
    patches = jnp.pad(patches, ((0, 0), (0, K_pad - K)))

    # Conv2d weight (H, C, P, P) -> matmul weight (K_pad, H_pad), bf16.
    w = params["conv_w"].reshape(hidden_dim, K).T
    w = jnp.pad(w, ((0, K_pad - K), (0, H_pad - hidden_dim))).astype(jnp.bfloat16)

    # Fold (conv_bias + img_embedding) into every row of the pos table
    # (exact because each one-hot row sums to 1); cast table to bf16.
    bias = (params["conv_b"] + params["img_emb"]).astype(jnp.float32)
    n_pos = params["pos_emb"].shape[0]
    NP_pad = _round_up(n_pos, 128)
    table = params["pos_emb"].astype(jnp.float32) + bias[None, :]
    table = jnp.pad(table, ((0, NP_pad - n_pos), (0, H_pad - hidden_dim)))
    table = table.astype(jnp.bfloat16)

    # ---- tiling: TM multiple of 8, prefer an exact divisor of M ------------
    TM = min(_round_up(tile_m, 8), _round_up(M, 8))
    if M % 8 == 0:
        cand = TM
        while cand >= 8 and M % cand != 0:
            cand -= 8
        if cand >= 8:
            TM = cand
    M_pad = _round_up(M, TM)

    # ---- VMEM-budget-driven TN / TM (generation-aware) ---------------------
    out_itemsize = jnp.dtype(out_dtype).itemsize

    def footprint(tm, tn):
        return (2 * tm * K_pad * 2          # patches, double-buffered bf16
                + 2 * tm * 1 * 4            # ids, double-buffered int32
                + K_pad * tn * 2            # weight, single-buffered bf16
                + NP_pad * tn * 2           # pos table, single-buffered bf16
                + 2 * tm * tn * out_itemsize)  # out, double-buffered

    try:
        vmem_cap = pltpu.get_tpu_info().vmem_capacity_bytes
    except Exception:
        vmem_cap = 64 * 1024 * 1024
    budget = int(vmem_cap * 0.6)

    tn_candidates = sorted(
        {d for d in range(128, H_pad + 1, 128) if H_pad % d == 0}, reverse=True)
    TN = tn_candidates[-1]
    for cand_tn in tn_candidates:          # largest TN that fits the budget
        if footprint(TM, cand_tn) <= budget:
            TN = cand_tn
            break
    while footprint(TM, TN) > budget and TM > 8:
        TM = max(8, (TM // 2 + 7) // 8 * 8)
        M_pad = _round_up(M, TM)

    vmem_limit = int(min(0.9 * vmem_cap,
                         max(2 * footprint(TM, TN) + (4 << 20), 16 << 20)))

    patches = jnp.pad(patches, ((0, M_pad - M), (0, 0)))
    ids = pos_inp.reshape(M, 1).astype(jnp.int32)
    ids = jnp.pad(ids, ((0, M_pad - M), (0, 0)))

    # Grid: N tiles outer (so W/table stay resident across the inner M loop),
    # M tiles inner (streams the large patches operand).
    grid = (H_pad // TN, M_pad // TM)
    out = pl.pallas_call(
        _embed_kernel,
        out_shape=jax.ShapeDtypeStruct((M_pad, H_pad), out_dtype),
        grid_spec=pltpu.PrefetchScalarGridSpec(
            num_scalar_prefetch=0,
            grid=grid,
            in_specs=[
                pl.BlockSpec((TM, 1), lambda j, i: (i, 0)),          # ids
                pl.BlockSpec((TM, K_pad), lambda j, i: (i, 0)),      # patches
                pl.BlockSpec((K_pad, TN), lambda j, i: (0, j),       # weight
                             pipeline_mode=pl.Buffered(1)),
                pl.BlockSpec((NP_pad, TN), lambda j, i: (0, j),      # pos table
                             pipeline_mode=pl.Buffered(1)),
            ],
            out_specs=pl.BlockSpec((TM, TN), lambda j, i: (i, j)),
        ),
        compiler_params=pltpu.CompilerParams(
            dimension_semantics=("parallel", "parallel"),
            vmem_limit_bytes=vmem_limit,
        ),
    )(ids, patches, w, table)

    # Dropout(p=0.1) in eval mode == identity.
    out = out[:M, :hidden_dim]
    return out.reshape(B, num_patches, hidden_dim)


def init_params(key, *, hidden_dim, num_pos_embeddings, patch_size, in_channels):
    k1, k2, k3, k4 = jax.random.split(key, 4)
    # xavier_uniform for conv weight: fan_in = C*P*P, fan_out = H*P*P
    fan_in = in_channels * patch_size * patch_size
    fan_out = hidden_dim * patch_size * patch_size
    bound_w = jnp.sqrt(6.0 / (fan_in + fan_out))
    conv_w = jax.random.uniform(
        k1, (hidden_dim, in_channels, patch_size, patch_size),
        minval=-bound_w, maxval=bound_w, dtype=jnp.float32)
    # PyTorch Conv2d default bias init: U(-1/sqrt(fan_in), 1/sqrt(fan_in))
    bound_b = 1.0 / jnp.sqrt(fan_in)
    conv_b = jax.random.uniform(
        k2, (hidden_dim,), minval=-bound_b, maxval=bound_b, dtype=jnp.float32)
    # xavier_uniform for embedding table
    bound_e = jnp.sqrt(6.0 / (num_pos_embeddings + hidden_dim))
    pos_emb = jax.random.uniform(
        k3, (num_pos_embeddings, hidden_dim),
        minval=-bound_e, maxval=bound_e, dtype=jnp.float32)
    # img_embedding ~ N(0, 0.02)
    img_emb = 0.02 * jax.random.normal(k4, (hidden_dim,), dtype=jnp.float32)
    return {"conv_w": conv_w, "conv_b": conv_b,
            "pos_emb": pos_emb, "img_emb": img_emb}


def reference_forward(img, pos_inp, params, *, patch_size, hidden_dim):
    """Pure-JAX reference (mirrors the PyTorch forward) for a sanity check."""
    conv_out = jax.lax.conv_general_dilated(
        img, params["conv_w"],
        window_strides=(patch_size, patch_size), padding="VALID",
        dimension_numbers=("NCHW", "OIHW", "NCHW"))
    conv_out = conv_out + params["conv_b"][None, :, None, None]
    B = img.shape[0]
    embed = conv_out.reshape(B, hidden_dim, -1).transpose(0, 2, 1)
    embed = embed + params["pos_emb"][pos_inp] + params["img_emb"]
    return embed


if __name__ == "__main__":
    # Small shapes consistent with the module.
    B, C, H, W = 2, 3, 16, 16
    patch_size = 4
    hidden_dim = 32
    num_patches = (H // patch_size) * (W // patch_size)   # 16
    num_pos_embeddings = 64

    key = jax.random.PRNGKey(0)
    kimg, kpos, kparams = jax.random.split(key, 3)
    img = jax.random.normal(kimg, (B, C, H, W), dtype=jnp.float32)
    pos_inp = jax.random.randint(kpos, (B, num_patches), 0,
                                 num_pos_embeddings, dtype=jnp.int32)
    params = init_params(kparams, hidden_dim=hidden_dim,
                         num_pos_embeddings=num_pos_embeddings,
                         patch_size=patch_size, in_channels=C)

    fwd = functools.partial(image_embedder_forward,
                            patch_size=patch_size, hidden_dim=hidden_dim)
    out = fwd(img, pos_inp, params)
    out = jax.block_until_ready(out)

    ref = reference_forward(img, pos_inp, params,
                            patch_size=patch_size, hidden_dim=hidden_dim)
    assert out.shape == (B, num_patches, hidden_dim)
    # bf16 MXU matmuls (projection + pos gather) -> loosen tolerance vs f32 ref.
    assert jnp.allclose(out, ref, atol=1e-2, rtol=1e-2), float(
        jnp.max(jnp.abs(out - ref)))
    print("KERNEL_OK")
</pallas_src>

<mosaic_0001>
module attributes {stable_mosaic.version = 11 : i64} {
  func.func @_embed_kernel(%arg0: i32, %arg1: i32, %arg2: memref<32x1xi32, #tpu.memory_space<vmem>>, %arg3: memref<32x128xbf16, #tpu.memory_space<vmem>>, %arg4: memref<128x128xbf16, #tpu.memory_space<vmem>>, %arg5: memref<128x128xbf16, #tpu.memory_space<vmem>>, %arg6: memref<32x128xf32, #tpu.memory_space<vmem>>) attributes {dimension_semantics = [#tpu.dimension_semantics<parallel>, #tpu.dimension_semantics<parallel>], iteration_bounds = array<i64: 1, 1>, scalar_prefetch = 0 : i64, scratch_operands = 0 : i64, tpu.core_type = #tpu.core_type<tc>, window_params = [{transform_indices = @transform_0, window_bounds = array<i64: 32, 1>}, {transform_indices = @transform_1, window_bounds = array<i64: 32, 128>}, {pipeline_mode = #tpu.pipeline_mode<synchronous>, transform_indices = @transform_2, window_bounds = array<i64: 128, 128>}, {pipeline_mode = #tpu.pipeline_mode<synchronous>, transform_indices = @transform_3, window_bounds = array<i64: 128, 128>}, {transform_indices = @transform_4, window_bounds = array<i64: 32, 128>}]} {
    %c0 = arith.constant 0 : index
    %c0_0 = arith.constant 0 : index
    %0 = vector.load %arg3[%c0, %c0_0] : memref<32x128xbf16, #tpu.memory_space<vmem>>, vector<32x128xbf16>
    %c0_1 = arith.constant 0 : index
    %c0_2 = arith.constant 0 : index
    %1 = vector.load %arg4[%c0_1, %c0_2] : memref<128x128xbf16, #tpu.memory_space<vmem>>, vector<128x128xbf16>
    %cst = arith.constant dense<0.000000e+00> : vector<32x128xf32>
    %2 = tpu.matmul %0, %1, %cst {dimension_numbers = #tpu.dot_dimension_numbers<[1], [0], [0], [1], [0, 0, 1, 1], [], []>} : vector<32x128xbf16>, vector<128x128xbf16>, vector<32x128xf32> -> vector<32x128xf32>
    %c0_3 = arith.constant 0 : index
    %c0_4 = arith.constant 0 : index
    %3 = vector.load %arg2[%c0_3, %c0_4] : memref<32x1xi32, #tpu.memory_space<vmem>>, vector<32x1xi32>
    %4 = tpu.iota {dimensions = array<i32: 1>} : vector<32x128xi32>
    %5 = vector.broadcast %3 : vector<32x1xi32> to vector<32x128xi32>
    %6 = arith.cmpi eq, %4, %5 : vector<32x128xi32>
    %7 = arith.extui %6 : vector<32x128xi1> to vector<32x128xi32>
    %8 = arith.sitofp %7 : vector<32x128xi32> to vector<32x128xf32>
    %9 = arith.truncf %8 : vector<32x128xf32> to vector<32x128xbf16>
    %c0_5 = arith.constant 0 : index
    %c0_6 = arith.constant 0 : index
    %10 = vector.load %arg5[%c0_5, %c0_6] : memref<128x128xbf16, #tpu.memory_space<vmem>>, vector<128x128xbf16>
    %cst_7 = arith.constant dense<0.000000e+00> : vector<32x128xf32>
    %11 = tpu.matmul %9, %10, %cst_7 {dimension_numbers = #tpu.dot_dimension_numbers<[1], [0], [0], [1], [0, 0, 1, 1], [], []>} : vector<32x128xbf16>, vector<128x128xbf16>, vector<32x128xf32> -> vector<32x128xf32>
    %12 = arith.addf %2, %11 : vector<32x128xf32>
    %c0_8 = arith.constant 0 : index
    %c0_9 = arith.constant 0 : index
    %13 = vector.load %arg6[%c0_8, %c0_9] : memref<32x128xf32, #tpu.memory_space<vmem>>, vector<32x128xf32>
    tpu.vector_store %arg6[%c0_8, %c0_9], %12 {strides = array<i32>} : memref<32x128xf32, #tpu.memory_space<vmem>>, vector<32x128xf32>,
    return
  }
  func.func @transform_0(%arg0: i32, %arg1: i32) -> (i32, i32) {
    %c0_i32 = arith.constant 0 : i32
    %c0_i32_0 = arith.constant 0 : i32
    return %arg1, %c0_i32 : i32, i32
  }
  func.func @transform_1(%arg0: i32, %arg1: i32) -> (i32, i32) {
    %c0_i32 = arith.constant 0 : i32
    %c0_i32_0 = arith.constant 0 : i32
    return %arg1, %c0_i32 : i32, i32
  }
  func.func @transform_2(%arg0: i32, %arg1: i32) -> (i32, i32) {
    %c0_i32 = arith.constant 0 : i32
    %c0_i32_0 = arith.constant 0 : i32
    return %c0_i32, %arg0 : i32, i32
  }
  func.func @transform_3(%arg0: i32, %arg1: i32) -> (i32, i32) {
    %c0_i32 = arith.constant 0 : i32
    %c0_i32_0 = arith.constant 0 : i32
    return %c0_i32, %arg0 : i32, i32
  }
  func.func @transform_4(%arg0: i32, %arg1: i32) -> (i32, i32) {
    %c0_i32 = arith.constant 0 : i32
    return %arg1, %arg0 : i32, i32
  }
}

</mosaic_0001>

<bundles_post_ra>
// kernel: tpu_custom_call.1
= control target key start
LH: loop header
LB: loop body
LE: loop exit
PB: predicated region body
PF: predicated region fallthrough
CT: control target
= control target key end

     0   :  { %9 = vsyncpa [#allocation3], 0  ;;  %s552_s0 = inlined_call_operand.vmem [shape: s32[32,1], index: 0, kind: input, shape index: {}]   ;;  %s553_s1 = inlined_call_operand.vmem [shape: bf16[32,128], index: 1, kind: input, shape index: {}]   ;;  %s554_s2 = inlined_call_operand.hbm [shape: bf16[128,128], index: 2, kind: input, shape index: {}]   ;;  %s555_s3 = inlined_call_operand.hbm [shape: bf16[128,128], index: 3, kind: input, shape index: {}]   ;;  %s556_s4 = inlined_call_operand.hbm [shape: f32[32,128], index: 4, kind: output, shape index: {}]  }
   0x1   :  { %10 = vsyncpa [#allocation6], 0 }
   0x2   :  { %11 = vsyncpa [#allocation4], 0  ;;  %s20_s17 = sshll.u32 %s554_s2, 4  ;;  %s491_s18 = smov [#allocation2]   ;;  %s21_s17 = int_to_ptr.hbm [resolvable:$true] %s20_s17 }
   0x3   :  { %s22_s19 = sshll.u32 %s491_s18, 4  ;;  %s33_s22 = sshll.u32 %s555_s3, 4  ;;  %s23_s19 = int_to_ptr.vmem [resolvable:$true] %s22_s19  ;;  %s34_s22 = int_to_ptr.hbm [resolvable:$true] %s33_s22 }
   0x4   :  { %s492_s23 = smov 64   ;;  %s493_s24 = smov 4  }
   0x5   :  { %28 = dma.hbm_to_vmem [thread:$0]  %s21_s17, 1024, %s23_s19, [#allocation3], %s492_s23, %s492_s23, %s493_s24  }
   0x6   :  { %s494_s25 = smov [#allocation5]  }
   0x7   :  { %s35_s26 = sshll.u32 %s494_s25, 4  ;;  %s36_s26 = int_to_ptr.vmem [resolvable:$true] %s35_s26 }
   0x8   :  { %41 = dma.hbm_to_vmem [thread:$0]  %s34_s22, 1024, %s36_s26, [#allocation6], %s492_s23, %s492_s23, %s493_s24  }
   0x9   :  { %485 = dma.done.wait [#allocation3], 1024  }
   0xa   :  { %486 = vsyncadd [#allocation3], 4294966272 }
   0xb   :  { %487 = dma.done.wait [#allocation6], 1024  }
   0xc   :  { %488 = vsyncadd [#allocation6], 4294966272  ;;  %v495_v0 = vmov 0   ;;  %v72_v1 = vld [vmem:[%s552_s0 + $0x10] sm:$0xff]  ;;  %v70_v2 = vld [vmem:[%s552_s0] sm:$0xff]  ;;  %v74_v25 = vlaneseq  ;;  %s274_s13 = sshll.u32 %s556_s4, 4  ;;  %s275_s13 = int_to_ptr.hbm [resolvable:$true] %s274_s13 }
   0xd   :  { %412 = vset.pattern.permute.xlu1 %v495_v0  ;;  %411 = vset.pattern.permute.xlu0 %v495_v0  ;;  %v377_v3 = vld [vmem:[#allocation2 + $0x38] sm:$0xff]  ;;  %v376_v5 = vld [vmem:[#allocation2 + $0x30] sm:$0xff]  ;;  %v71_v8 = vld [vmem:[%s552_s0 + $0x8] sm:$0xff]  ;;  %v496_v29 = vmov 1.0|1.0   ;;  %s498_s14 = smov 128  }
   0xe   :  { %83 = vperm.xlu0 %411, %v72_v1   ;;  %77 = vperm.xlu1 %412, %v70_v2   ;;  %v385_v4 = vld [vmem:[#allocation5 + $0x38] sm:$0xff]  ;;  %v384_v6 = vld [vmem:[#allocation5 + $0x30] sm:$0xff]  ;;  %v375_v9 = vld [vmem:[#allocation2 + $0x28] sm:$0xff]  ;;  %v75_v26 = vand.u32 127, %v74_v25  ;;  %s499_s15 = smov 8  }
   0xf   :  { %394 = vmatpush.bf16.msra.mxu3 %v377_v3  ;;  %245 = vmatpush.bf16.msra.mxu1 %v377_v3  ;;  %v73_v7 = vld [vmem:[%s552_s0 + $0x18] sm:$0xff]  ;;  %v383_v10 = vld [vmem:[#allocation5 + $0x28] sm:$0xff]  ;;  %v374_v11 = vld [vmem:[#allocation2 + $0x20] sm:$0xff] }
  0x10   :  { %166 = vmatpush.bf16.msra.mxu0 %v385_v4  ;;  %386 = vmatpush.bf16.msra.mxu2 %v385_v4  ;;  %v382_v12 = vld [vmem:[#allocation5 + $0x20] sm:$0xff]  ;;  %v373_v13 = vld [vmem:[#allocation2 + $0x18] sm:$0xff]  ;;  %v372_v15 = vld [vmem:[#allocation2 + $0x10] sm:$0xff] }
  0x11   :  { %v381_v14 = vld [vmem:[#allocation5 + $0x18] sm:$0xff]  ;;  %v380_v16 = vld [vmem:[#allocation5 + $0x10] sm:$0xff]  ;;  %v371_v17 = vld [vmem:[#allocation2 + $0x8] sm:$0xff] }
  0x12   :  { %v370_v18 = vld [vmem:[#allocation2] sm:$0xff]  ;;  %v369_v19 = vld [vmem:[%s553_s1 + $0x8] sm:$0xff] }
  0x13   :  { %395 = vmatpush.bf16.msra.mxu3 %v376_v5  ;;  %246 = vmatpush.bf16.msra.mxu1 %v376_v5  ;;  %v379_v20 = vld [vmem:[#allocation5 + $0x8] sm:$0xff]  ;;  %v378_v21 = vld [vmem:[#allocation5] sm:$0xff] }
  0x14   :  { %167 = vmatpush.bf16.msra.mxu0 %v384_v6  ;;  %387 = vmatpush.bf16.msra.mxu2 %v384_v6  ;;  %v368_v22 = vld [vmem:[%s553_s1] sm:$0xff]  ;;  %s497_s1 = smov [#allocation7]  }
  0x15   :  { %s272_s10 = sshll.u32 %s497_s1, 4  ;;  %s273_s10 = int_to_ptr.vmem [resolvable:$true] %s272_s10 }
  0x16   :  { %86 = vperm.xlu0 %411, %v73_v7   ;;  %80 = vperm.xlu1 %412, %v71_v8  }
  0x17   :  { %396 = vmatpush.bf16.msra.mxu3 %v375_v9  ;;  %247 = vmatpush.bf16.msra.mxu1 %v375_v9 }
  0x18   :  { %168 = vmatpush.bf16.msra.mxu0 %v383_v10  ;;  %388 = vmatpush.bf16.msra.mxu2 %v383_v10 }
  0x1b   :  { %397 = vmatpush.bf16.msra.mxu3 %v374_v11  ;;  %248 = vmatpush.bf16.msra.mxu1 %v374_v11 }
  0x1c   :  { %169 = vmatpush.bf16.msra.mxu0 %v382_v12  ;;  %389 = vmatpush.bf16.msra.mxu2 %v382_v12 }
  0x1f   :  { %398 = vmatpush.bf16.msra.mxu3 %v373_v13  ;;  %249 = vmatpush.bf16.msra.mxu1 %v373_v13 }
  0x20   :  { %170 = vmatpush.bf16.msra.mxu0 %v381_v14  ;;  %390 = vmatpush.bf16.msra.mxu2 %v381_v14 }
  0x23   :  { %399 = vmatpush.bf16.msra.mxu3 %v372_v15  ;;  %250 = vmatpush.bf16.msra.mxu1 %v372_v15 }
  0x24   :  { %171 = vmatpush.bf16.msra.mxu0 %v380_v16  ;;  %391 = vmatpush.bf16.msra.mxu2 %v380_v16 }
  0x27   :  { %400 = vmatpush.bf16.msra.mxu3 %v371_v17  ;;  %251 = vmatpush.bf16.msra.mxu1 %v371_v17 }
  0x28   :  { %172 = vmatpush.bf16.msra.mxu0 %v379_v20  ;;  %392 = vmatpush.bf16.msra.mxu2 %v379_v20 }
  0x2b   :  { %401 = vmatpush.bf16.msra.mxu3 %v370_v18  ;;  %252 = vmatpush.bf16.msra.mxu1 %v370_v18 }
  0x2c   :  { %173 = vmatpush.bf16.msra.mxu0 %v378_v21  ;;  %393 = vmatpush.bf16.msra.mxu2 %v378_v21 }
  0x2e   :  { %258 = vmatmul.bf16.vlgmr.msra.gmra.mxu3 %v369_v19  ;;  %253 = vmatmul.bf16.vlgmr.msra.gmra.mxu1 %v368_v22 }
  0x80   :  { %v84_v23 = vpop.permute.xlu0 %83  ;;  %v78_v24 = vpop.permute.xlu1 %77 }
  0x81   :  { %vm90_vm0 = vcmp.eq.s32.totalorder %v75_v26, %v84_v23  ;;  %vm88_vm3 = vcmp.eq.s32.totalorder %v75_v26, %v78_v24 }
  0x88   :  { %v87_v27 = vpop.permute.xlu0 %86  ;;  %v81_v28 = vpop.permute.xlu1 %80 }
  0x89   :  { %vm91_vm1 = vcmp.eq.s32.totalorder %v75_v26, %v87_v27  ;;  %vm89_vm2 = vcmp.eq.s32.totalorder %v75_v26, %v81_v28 }
  0x8a   :  { %vm326_vm4 = vmpackc.low %vm91_vm1, %vm90_vm0 }
  0x8b   :  { %vm324_vm5 = vmpackc.low %vm89_vm2, %vm88_vm3  ;;  %327 = vmatmul.msk.bf16.vlgmr.msra.gmra.mxu2 %vm326_vm4, %v496_v29 }
  0x8c   :  { %325 = vmatmul.msk.bf16.vlgmr.msra.gmra.mxu0 %vm324_vm5, %v496_v29 }
  0xab   :  { %v254_v30 = vpop.f32.mrf.mxu1 }
  0xb1   :  { %v259_v33 = vpop.f32.mrf.mxu3 }
  0xb3   :  { %v256_v36 = vpop.f32.mrf.mxu1 }
  0xb9   :  { %v261_v39 = vpop.f32.mrf.mxu3 }
 0x109   :  { %v175_v31 = vpop.f32.mrf.mxu0 }
 0x10a   :  { %v255_v32 = vadd.f32 %v254_v30, %v175_v31 }
 0x10c   :  { %264 = vst [vmem:[#allocation7] sm:$0xff] %v255_v32 }
 0x10e   :  { %v180_v34 = vpop.f32.mrf.mxu2 }
 0x10f   :  { %v260_v35 = vadd.f32 %v259_v33, %v180_v34 }
 0x111   :  { %266 = vst [vmem:[#allocation7 + $0x10] sm:$0xff] %v260_v35  ;;  %v177_v37 = vpop.f32.mrf.mxu0 }
 0x112   :  { %v257_v38 = vadd.f32 %v256_v36, %v177_v37 }
 0x114   :  { %265 = vst [vmem:[#allocation7 + $0x8] sm:$0xff] %v257_v38 }
 0x116   :  { %v182_v40 = vpop.f32.mrf.mxu2 }
 0x117   :  { %v262_v41 = vadd.f32 %v261_v39, %v182_v40 }
 0x119   :  { %267 = vst [vmem:[#allocation7 + $0x18] sm:$0xff] %v262_v41 }
 0x11a   :  { %280 = dma.vmem_to_hbm [thread:$0]  %s273_s10, 512, %s275_s13, [#allocation4], %s498_s14, %s498_s14, %s499_s15  }
 0x11b   :  { %489 = dma.done.wait [#allocation4], 512  }
 0x11c   :  { %490 = vsyncadd [#allocation4], 4294966784 }
 0x11d   :  { %285 = vsyncpa [#allocation3], 1 }
 0x11e   :  { %286 = vsyncpa [#allocation6], 1 }
 0x11f   :  { %287 = vsyncpa [#allocation4], 1 }

</bundles_post_ra>
